<compile_context>
chip_gen: v5e
topology: v5e:2x2
jax: 0.10.0
libtpu: 0.0.40
codegen_flags: <defaults>
</compile_context>

<pallas_src>
import jax
import jax.numpy as jnp
import numpy as np
from jax.experimental import pallas as pl
from jax.experimental.pallas import tpu as pltpu


def conv_stats_kernel(x_ref, w_ref, y_ref, psum_ref, psq_ref):
    """Fused conv-as-single-matmul + per-block batch-stat partials.

    x_ref:    (1, K, TM)       bf16  im2col columns for this spatial tile (K=k*k*Cin)
    w_ref:    (Cout, K)        bf16  flattened conv weights (resident across grid)
    y_ref:    (1, Cout, TM)    f32   conv output tile (TM lanes -> lane-dense store)
    psum_ref: (1, 1, Cout, 1)  f32   per-block partial sum over the TM axis
    psq_ref:  (1, 1, Cout, 1)  f32   per-block partial sum of squares
    """
    # single MXU matmul, K = k*k*Cin contraction, f32 accumulation
    acc = jnp.dot(w_ref[...], x_ref[0], preferred_element_type=jnp.float32)
    y_ref[...] = acc[None]
    # cross-lane reductions (XLU) -> tiny per-block partials; grid stays parallel
    psum_ref[...] = jnp.sum(acc, axis=1, keepdims=True)[None, None]
    psq_ref[...] = jnp.sum(acc * acc, axis=1, keepdims=True)[None, None]


def bn_relu_kernel(y_ref, s_ref, b_ref, o_ref):
    """Fused normalize + affine + ReLU on a lane-dense (Cout, TM) tile."""
    y = y_ref[...]            # (1, Cout, TM)
    s = s_ref[...][None]      # (1, Cout, 1) broadcast along lanes
    b = b_ref[...][None]
    o_ref[...] = jnp.maximum(y * s + b, 0.0)


@jax.jit
def block_forward(x_nchw, w_oihw, gamma, beta, eps=1e-5):
    """relu(batchnorm(conv2d(x))); conv: stride 1, padding k//2, no bias."""
    N, Cin, H, W = x_nchw.shape
    Cout, _, k, _ = w_oihw.shape
    p = k // 2
    HW = H * W
    K = k * k * Cin

    # lane tile over spatial positions; for large images size this to the
    # (double-buffered) VMEM budget of the target generation (v7x: 64 MiB phys).
    TM = 128 if HW % 128 == 0 else HW
    n_tiles = HW // TM
    grid = (N, n_tiles)

    # ---- glue: pad + im2col layout (no compute), bf16 for the MXU operands ----
    xp = jnp.pad(x_nchw, ((0, 0), (0, 0), (p, p), (p, p)))
    taps = jnp.stack([xp[:, :, dy:dy + H, dx:dx + W]
                      for dy in range(k) for dx in range(k)], axis=2)  # (N,Cin,kk,H,W)
    x_col = taps.reshape(N, K, HW).astype(jnp.bfloat16)                # (N, K, HW)
    w_mat = w_oihw.reshape(Cout, K).astype(jnp.bfloat16)               # (Cout, K)

    # ---- Pallas kernel 1: conv (one matmul per tile) + partial batch stats ----
    y, psum, psq = pl.pallas_call(
        conv_stats_kernel,
        out_shape=(jax.ShapeDtypeStruct((N, Cout, HW), jnp.float32),
                   jax.ShapeDtypeStruct((N, n_tiles, Cout, 1), jnp.float32),
                   jax.ShapeDtypeStruct((N, n_tiles, Cout, 1), jnp.float32)),
        grid=grid,
        in_specs=[pl.BlockSpec((1, K, TM), lambda n, j: (n, 0, j)),
                  pl.BlockSpec((Cout, K), lambda n, j: (0, 0))],
        out_specs=(pl.BlockSpec((1, Cout, TM), lambda n, j: (n, 0, j)),
                   pl.BlockSpec((1, 1, Cout, 1), lambda n, j: (n, j, 0, 0)),
                   pl.BlockSpec((1, 1, Cout, 1), lambda n, j: (n, j, 0, 0))),
        compiler_params=pltpu.CompilerParams(
            dimension_semantics=("parallel", "parallel"),
            vmem_limit_bytes=32 * 1024 * 1024),
    )(x_col, w_mat)

    # ---- glue: fold batch stats + affine into per-channel scale/bias (tiny) ----
    cnt = jnp.float32(N * HW)
    mean = jnp.sum(psum, axis=(0, 1, 3)) / cnt
    var = jnp.maximum(jnp.sum(psq, axis=(0, 1, 3)) / cnt - mean * mean, 0.0)
    scale = gamma / jnp.sqrt(var + eps)
    bias = beta - mean * scale

    # ---- Pallas kernel 2: fused normalize + affine + ReLU (in place over y) ----
    out = pl.pallas_call(
        bn_relu_kernel,
        out_shape=jax.ShapeDtypeStruct((N, Cout, HW), jnp.float32),
        grid=grid,
        in_specs=[pl.BlockSpec((1, Cout, TM), lambda n, j: (n, 0, j)),
                  pl.BlockSpec((Cout, 1), lambda n, j: (0, 0)),
                  pl.BlockSpec((Cout, 1), lambda n, j: (0, 0))],
        out_specs=pl.BlockSpec((1, Cout, TM), lambda n, j: (n, 0, j)),
        input_output_aliases={0: 0},
        compiler_params=pltpu.CompilerParams(
            dimension_semantics=("parallel", "parallel"),
            vmem_limit_bytes=32 * 1024 * 1024),
    )(y, scale.reshape(Cout, 1), bias.reshape(Cout, 1))

    # (N, Cout, HW) is already channel-major -> NCHW with a free reshape
    return out.reshape(N, Cout, H, W)


def reference(x_nchw, w_oihw, gamma, beta, eps=1e-5):
    """Pure-JAX f32 reference matching the PyTorch module forward."""
    p = w_oihw.shape[2] // 2
    y = jax.lax.conv_general_dilated(
        x_nchw, w_oihw, window_strides=(1, 1),
        padding=[(p, p), (p, p)],
        dimension_numbers=('NCHW', 'OIHW', 'NCHW'))
    mean = y.mean(axis=(0, 2, 3), keepdims=True)
    var = ((y - mean) ** 2).mean(axis=(0, 2, 3), keepdims=True)
    yhat = (y - mean) / jnp.sqrt(var + eps)
    out = yhat * gamma[None, :, None, None] + beta[None, :, None, None]
    return jnp.maximum(out, 0.0)


if __name__ == "__main__":
    # small shapes consistent with the module
    N, Cin, H, W = 2, 4, 16, 16
    Cout, ksize = 8, 3

    key = jax.random.PRNGKey(0)
    k1, k2, k3, k4 = jax.random.split(key, 4)
    x = jax.random.normal(k1, (N, Cin, H, W), jnp.float32)

    # deterministic parameter init (shapes from Block.__init__)
    fan_in = Cin * ksize * ksize
    w = jax.random.uniform(k2, (Cout, Cin, ksize, ksize), jnp.float32,
                           minval=-1.0, maxval=1.0) / np.sqrt(fan_in)   # conv weight
    gamma = 1.0 + 0.1 * jax.random.normal(k3, (Cout,), jnp.float32)     # bn.weight
    beta = 0.1 * jax.random.normal(k4, (Cout,), jnp.float32)            # bn.bias

    out = block_forward(x, w, gamma, beta)
    out = jax.block_until_ready(out)

    ref = reference(x, w, gamma, beta)
    # Tolerance reflects bf16 MXU inputs (f32 accumulation); the f32 reference
    # uses full-precision conv.  A layout/stats bug would be O(0.1-1), far above.
    np.testing.assert_allclose(np.asarray(out), np.asarray(ref), rtol=2e-2, atol=2e-2)
    print("KERNEL_OK")
</pallas_src>

<mosaic_0001>
module attributes {stable_mosaic.version = 11 : i64} {
  func.func @conv_stats_kernel(%arg0: i32, %arg1: i32, %arg2: memref<1x36x128xbf16, #tpu.memory_space<vmem>>, %arg3: memref<8x36xbf16, #tpu.memory_space<vmem>>, %arg4: memref<1x8x128xf32, #tpu.memory_space<vmem>>, %arg5: memref<1x1x8x1xf32, #tpu.memory_space<vmem>>, %arg6: memref<1x1x8x1xf32, #tpu.memory_space<vmem>>) attributes {dimension_semantics = [#tpu.dimension_semantics<parallel>, #tpu.dimension_semantics<parallel>], iteration_bounds = array<i64: 2, 2>, scalar_prefetch = 0 : i64, scratch_operands = 0 : i64, tpu.core_type = #tpu.core_type<tc>, window_params = [{transform_indices = @transform_0, window_bounds = array<i64: 1, 36, 128>}, {pipeline_mode = #tpu.pipeline_mode<synchronous>, transform_indices = @transform_1, window_bounds = array<i64: 8, 36>}, {transform_indices = @transform_2, window_bounds = array<i64: 1, 8, 128>}, {transform_indices = @transform_3, window_bounds = array<i64: 1, 1, 8, 1>}, {transform_indices = @transform_4, window_bounds = array<i64: 1, 1, 8, 1>}]} {
    %c0 = arith.constant 0 : index
    %c0_0 = arith.constant 0 : index
    %0 = vector.load %arg3[%c0, %c0_0] : memref<8x36xbf16, #tpu.memory_space<vmem>>, vector<8x36xbf16>
    %c0_1 = arith.constant 0 : index
    %c0_2 = arith.constant 0 : index
    %c0_3 = arith.constant 0 : index
    %1 = vector.load %arg2[%c0_1, %c0_2, %c0_3] : memref<1x36x128xbf16, #tpu.memory_space<vmem>>, vector<1x36x128xbf16>
    %2 = vector.shape_cast %1 : vector<1x36x128xbf16> to vector<36x128xbf16>
    %cst = arith.constant dense<0.000000e+00> : vector<8x128xf32>
    %3 = tpu.matmul %0, %2, %cst {dimension_numbers = #tpu.dot_dimension_numbers<[1], [0], [0], [1], [0, 0, 1, 1], [], []>} : vector<8x36xbf16>, vector<36x128xbf16>, vector<8x128xf32> -> vector<8x128xf32>
    %4 = vector.shape_cast %3 : vector<8x128xf32> to vector<1x8x128xf32>
    %c0_4 = arith.constant 0 : index
    %c0_5 = arith.constant 0 : index
    %c0_6 = arith.constant 0 : index
    %5 = vector.load %arg4[%c0_4, %c0_5, %c0_6] : memref<1x8x128xf32, #tpu.memory_space<vmem>>, vector<1x8x128xf32>
    tpu.vector_store %arg4[%c0_4, %c0_5, %c0_6], %4 {strides = array<i32>} : memref<1x8x128xf32, #tpu.memory_space<vmem>>, vector<1x8x128xf32>,
    %cst_7 = arith.constant dense<0.000000e+00> : vector<8xf32>
    %6 = vector.multi_reduction <add>, %3, %cst_7 [1] : vector<8x128xf32> to vector<8xf32>
    %7 = vector.shape_cast %6 : vector<8xf32> to vector<8x1xf32>
    %8 = vector.shape_cast %7 : vector<8x1xf32> to vector<1x1x8x1xf32>
    %c0_8 = arith.constant 0 : index
    %c0_9 = arith.constant 0 : index
    %c0_10 = arith.constant 0 : index
    %c0_11 = arith.constant 0 : index
    %9 = vector.load %arg5[%c0_8, %c0_9, %c0_10, %c0_11] : memref<1x1x8x1xf32, #tpu.memory_space<vmem>>, vector<1x1x8x1xf32>
    tpu.vector_store %arg5[%c0_8, %c0_9, %c0_10, %c0_11], %8 {strides = array<i32>} : memref<1x1x8x1xf32, #tpu.memory_space<vmem>>, vector<1x1x8x1xf32>,
    %10 = arith.mulf %3, %3 : vector<8x128xf32>
    %cst_12 = arith.constant dense<0.000000e+00> : vector<8xf32>
    %11 = vector.multi_reduction <add>, %10, %cst_12 [1] : vector<8x128xf32> to vector<8xf32>
    %12 = vector.shape_cast %11 : vector<8xf32> to vector<8x1xf32>
    %13 = vector.shape_cast %12 : vector<8x1xf32> to vector<1x1x8x1xf32>
    %c0_13 = arith.constant 0 : index
    %c0_14 = arith.constant 0 : index
    %c0_15 = arith.constant 0 : index
    %c0_16 = arith.constant 0 : index
    %14 = vector.load %arg6[%c0_13, %c0_14, %c0_15, %c0_16] : memref<1x1x8x1xf32, #tpu.memory_space<vmem>>, vector<1x1x8x1xf32>
    tpu.vector_store %arg6[%c0_13, %c0_14, %c0_15, %c0_16], %13 {strides = array<i32>} : memref<1x1x8x1xf32, #tpu.memory_space<vmem>>, vector<1x1x8x1xf32>,
    return
  }
  func.func @transform_0(%arg0: i32, %arg1: i32) -> (i32, i32, i32) {
    %c0_i32 = arith.constant 0 : i32
    %c0_i32_0 = arith.constant 0 : i32
    return %arg0, %c0_i32, %arg1 : i32, i32, i32
  }
  func.func @transform_1(%arg0: i32, %arg1: i32) -> (i32, i32) {
    %c0_i32 = arith.constant 0 : i32
    %c0_i32_0 = arith.constant 0 : i32
    %c0_i32_1 = arith.constant 0 : i32
    return %c0_i32, %c0_i32_0 : i32, i32
  }
  func.func @transform_2(%arg0: i32, %arg1: i32) -> (i32, i32, i32) {
    %c0_i32 = arith.constant 0 : i32
    %c0_i32_0 = arith.constant 0 : i32
    return %arg0, %c0_i32, %arg1 : i32, i32, i32
  }
  func.func @transform_3(%arg0: i32, %arg1: i32) -> (i32, i32, i32, i32) {
    %c0_i32 = arith.constant 0 : i32
    %c0_i32_0 = arith.constant 0 : i32
    %c0_i32_1 = arith.constant 0 : i32
    return %arg0, %arg1, %c0_i32, %c0_i32_0 : i32, i32, i32, i32
  }
  func.func @transform_4(%arg0: i32, %arg1: i32) -> (i32, i32, i32, i32) {
    %c0_i32 = arith.constant 0 : i32
    %c0_i32_0 = arith.constant 0 : i32
    %c0_i32_1 = arith.constant 0 : i32
    return %arg0, %arg1, %c0_i32, %c0_i32_0 : i32, i32, i32, i32
  }
}

module attributes {stable_mosaic.version = 11 : i64} {
  func.func @bn_relu_kernel(%arg0: i32, %arg1: i32, %arg2: memref<1x8x128xf32, #tpu.memory_space<vmem>>, %arg3: memref<8x1xf32, #tpu.memory_space<vmem>>, %arg4: memref<8x1xf32, #tpu.memory_space<vmem>>, %arg5: memref<1x8x128xf32, #tpu.memory_space<vmem>>) attributes {dimension_semantics = [#tpu.dimension_semantics<parallel>, #tpu.dimension_semantics<parallel>], iteration_bounds = array<i64: 2, 2>, scalar_prefetch = 0 : i64, scratch_operands = 0 : i64, tpu.core_type = #tpu.core_type<tc>, window_params = [{transform_indices = @transform_0, window_bounds = array<i64: 1, 8, 128>}, {pipeline_mode = #tpu.pipeline_mode<synchronous>, transform_indices = @transform_1, window_bounds = array<i64: 8, 1>}, {pipeline_mode = #tpu.pipeline_mode<synchronous>, transform_indices = @transform_2, window_bounds = array<i64: 8, 1>}, {transform_indices = @transform_3, window_bounds = array<i64: 1, 8, 128>}]} {
    %c0 = arith.constant 0 : index
    %c0_0 = arith.constant 0 : index
    %c0_1 = arith.constant 0 : index
    %0 = vector.load %arg2[%c0, %c0_0, %c0_1] : memref<1x8x128xf32, #tpu.memory_space<vmem>>, vector<1x8x128xf32>
    %c0_2 = arith.constant 0 : index
    %c0_3 = arith.constant 0 : index
    %1 = vector.load %arg3[%c0_2, %c0_3] : memref<8x1xf32, #tpu.memory_space<vmem>>, vector<8x1xf32>
    %2 = vector.shape_cast %1 : vector<8x1xf32> to vector<1x8x1xf32>
    %c0_4 = arith.constant 0 : index
    %c0_5 = arith.constant 0 : index
    %3 = vector.load %arg4[%c0_4, %c0_5] : memref<8x1xf32, #tpu.memory_space<vmem>>, vector<8x1xf32>
    %4 = vector.shape_cast %3 : vector<8x1xf32> to vector<1x8x1xf32>
    %5 = vector.broadcast %2 : vector<1x8x1xf32> to vector<1x8x128xf32>
    %6 = arith.mulf %0, %5 : vector<1x8x128xf32>
    %7 = vector.broadcast %4 : vector<1x8x1xf32> to vector<1x8x128xf32>
    %8 = arith.addf %6, %7 : vector<1x8x128xf32>
    %cst = arith.constant 0.000000e+00 : f32
    %9 = vector.broadcast %cst : f32 to vector<1x8x128xf32>
    %10 = arith.maximumf %8, %9 : vector<1x8x128xf32>
    %c0_6 = arith.constant 0 : index
    %c0_7 = arith.constant 0 : index
    %c0_8 = arith.constant 0 : index
    %11 = vector.load %arg5[%c0_6, %c0_7, %c0_8] : memref<1x8x128xf32, #tpu.memory_space<vmem>>, vector<1x8x128xf32>
    tpu.vector_store %arg5[%c0_6, %c0_7, %c0_8], %10 {strides = array<i32>} : memref<1x8x128xf32, #tpu.memory_space<vmem>>, vector<1x8x128xf32>,
    return
  }
  func.func @transform_0(%arg0: i32, %arg1: i32) -> (i32, i32, i32) {
    %c0_i32 = arith.constant 0 : i32
    %c0_i32_0 = arith.constant 0 : i32
    return %arg0, %c0_i32, %arg1 : i32, i32, i32
  }
  func.func @transform_1(%arg0: i32, %arg1: i32) -> (i32, i32) {
    %c0_i32 = arith.constant 0 : i32
    %c0_i32_0 = arith.constant 0 : i32
    %c0_i32_1 = arith.constant 0 : i32
    return %c0_i32, %c0_i32_0 : i32, i32
  }
  func.func @transform_2(%arg0: i32, %arg1: i32) -> (i32, i32) {
    %c0_i32 = arith.constant 0 : i32
    %c0_i32_0 = arith.constant 0 : i32
    %c0_i32_1 = arith.constant 0 : i32
    return %c0_i32, %c0_i32_0 : i32, i32
  }
  func.func @transform_3(%arg0: i32, %arg1: i32) -> (i32, i32, i32) {
    %c0_i32 = arith.constant 0 : i32
    %c0_i32_0 = arith.constant 0 : i32
    return %arg0, %c0_i32, %arg1 : i32, i32, i32
  }
}

</mosaic_0001>

<bundles_post_ra>
// kernel: block_forward.2
= control target key start
LH: loop header
LB: loop body
LE: loop exit
PB: predicated region body
PF: predicated region fallthrough
CT: control target
= control target key end

     0   :  { %s721_s15 = smov 0   ;;  %s723_s16 = smov 0   ;;  %s821_s0 = inlined_call_operand.vmem [shape: bf16[2,36,256], index: 0, kind: input, shape index: {}]   ;;  %s822_s1 = inlined_call_operand.vmem [shape: bf16[8,36], index: 1, kind: input, shape index: {}]   ;;  %s823_s2 = inlined_call_operand.vmem [shape: f32[2,8,256], index: 2, kind: output, shape index: {0}]   ;;  %s824_s3 = inlined_call_operand.vmem [shape: f32[2,2,8,1], index: 3, kind: output, shape index: {1}]   ;;  %s825_s4 = inlined_call_operand.vmem [shape: f32[2,2,8,1], index: 4, kind: output, shape index: {2}]  }
   0x1   :  { %s725_s17 = smov 0   ;;  %s727_s18 = smov 0  }
   0x2   :  { %s729_s19 = smov 0   ;;  %s731_s20 = smov 0  }
   0x3   :  { %s733_s21 = smov 0  }
   0x4 LB: > { %s24_s22 = sadd.s32 1, %s686_s19  ;;  %s27_s23 = sadd.s32 1, %s690_s20  ;;  %s694_s21 = sphi %s733_s21, %s15_s21   ;;  %s690_s20 = sphi %s731_s20, %s831_s20   ;;  %s686_s19 = sphi %s729_s19, %s830_s19   ;;  %s682_s18 = sphi %s727_s18, %s829_s18   ;;  %s678_s17 = sphi %s725_s17, %s828_s17   ;;  %s674_s16 = sphi %s723_s16, %s827_s16   ;;  %s670_s15 = sphi %s721_s15, %s826_s15  }
   0x5   : > { %p25_p0 = scmp.ge.s32.totalorder %s24_s22, 2  ;;  %p43_p1 = scmp.ne.s32.totalorder %s674_s16, %s670_s15 }
   0x6   : > { %p44_p2 = scmp.eq.s32.totalorder %s694_s21, 0  ;;  %s36_s27 = sadd.s32 1, %s674_s16 }
   0x7   : > { %s833_s22 = smov (%p25_p0, %s24_s22), 0  ;;  %s835_s23 = smov (!%p25_p0, %s27_s23), %s690_s20 }
   0x8   : > { %p45_p3 = por %p44_p2, %p43_p1  ;;  %p29_p4 = scmp.ge.s32.totalorder %s835_s23, 2 }
   0x9   : > { %s32_s24 = ssub.s32 %s686_s19, %s833_s22  ;;  %p559_p6 = scmp.ge.s32.totalorder %s694_s21, 4 }
   0xa   : > { %s837_s23 = smov (%p29_p4, %s835_s23), 0 }
   0xb   : > { %s31_s25 = ssub.s32 %s690_s20, %s837_s23  ;;  %177 = sbr.rel (%p559_p6) target bundleno = 28 (0x1c), region = 20 }
   0xc   : > { %s33_s26 = sor.u32 %s32_s24, %s31_s25 }
   0xd   : > { %p34_p5 = scmp.eq.s32.totalorder %s33_s26, 0 }
   0xf   : > { %s772_s28 = scalar_select %p34_p5, %s674_s16, %s36_s27  }
  0x10   : > { %180 = sbr.rel (!%p45_p3) target bundleno = 28 (0x1c), region = 24  ;;  %s182_s29 = sand.u32 (%p45_p3), 1, %s674_s16  }
  0x11   : > { %s582_s30 = smul.u32 (%p45_p3), 10, %s690_s20 }
  0x12   : > { %s581_s5 = smul.u32 (%p45_p3), 20, %s182_s29 }
  0x13   : > { %s186_s6 = sadd.s32 (%p45_p3), %s686_s19, %s582_s30 }
  0x14   : > { %s560_s7 = sshll.u32 (%p45_p3), %s186_s6, 2  ;;  %s184_s11 = scalar_lea.vmem (%p45_p3), [#allocation2], %s581_s5 }
  0x15   : > { %s188_s10 = scalar_lea.vmem %s821_s0, %s560_s7 }
  0x16   : > { %v205_v0 = vld [vmem:[%s188_s10] sm:$0xf]  ;;  %v207_v1 = vld [vmem:[%s188_s10 + $0x8] sm:$0xf]  ;;  %v209_v2 = vld [vmem:[%s188_s10 + $0x10] sm:$0xf] }
  0x17   : > { %206 = vst [vmem:[%s184_s11] sm:$0xf] %v205_v0  ;;  %v211_v3 = vld [vmem:[%s188_s10 + $0x18] sm:$0xf]  ;;  %v213_v4 = vld [vmem:[%s188_s10 + $0x20] sm:$0xf] }
  0x18   : > { %208 = vst [vmem:[%s184_s11 + $0x4] sm:$0xf] %v207_v1 }
  0x19   : > { %210 = vst [vmem:[%s184_s11 + $0x8] sm:$0xf] %v209_v2 }
  0x1a   : > { %212 = vst [vmem:[%s184_s11 + $0xc] sm:$0xf] %v211_v3 }
  0x1b   : > { %214 = vst [vmem:[%s184_s11 + $0x10] sm:$0xf] %v213_v4 }
  0x1c PF: > { %p561_p7 = scmp.ge.s32.totalorder %s694_s21, 1  ;;  %p247_p8 = scmp.lt.s32.totalorder %s694_s21, 5 }
  0x1e   : > { %p248_p9 = pnand %p561_p7, %p247_p8 }
  0x1f   : > { %s254_s12 = sand.u32 (!%p248_p9), 1, %s670_s15   ;;  %p298_p10 = scmp.lt.s32.totalorder (!%p248_p9), %s682_s18, 1 }
  0x20   : > { %251 = sbr.rel (%p248_p9) target bundleno = 305 (0x131), region = 65  ;;  %p300_p11 = scmp.lt.s32.totalorder (!%p248_p9), %s678_s17, 1 }
  0x21   : > { %s583_s13 = smul.u32 (!%p248_p9), 20, %s254_s12 }
  0x23   : > { %s256_s14 = scalar_lea.vmem (!%p248_p9), [#allocation2], %s583_s13 }
  0x25   : > { %v328_v5 = vld [vmem:[%s256_s14 + $0x10] sm:$0x3]  ;;  %vm348_vm0 = vcmask 1041408   ;;  %v580_v9 = vld [vmem:[%s256_s14 + $0x8] sm:$0xff]  ;;  %v579_v10 = vld [vmem:[%s256_s14] sm:$0xff]  ;;  %vm344_vm1 = vcmask 293888  }
  0x26   : > { %v338_v6 = vunpack.c.l.b16 %v328_v5  ;;  %v323_v11 = vld [vmem:[%s822_s1] sm:$0xf]  ;;  %s839_s18 = smov (!%p298_p10, %s682_s18), 1  ;;  %s841_s17 = smov (!%p300_p11, %s678_s17), 1  ;;  %vm368_vm2 = vcmask 7168  }
  0x27   : > { %s562_s15 = sshll.u32 %s839_s18, 1 }
  0x28   : > { %v341_v7 = vpack.c.b16 %v338_v6, %v338_v6  ;;  %s303_s26 = sadd.s32 %s562_s15, %s841_s17 }
  0x29   : > { %s563_s27 = sshll.u32 %s303_s26, 3 }
  0x2a   : > { %v350_v8 = vsel %vm348_vm0, %v341_v7, 0  ;;  %s305_s5 = scalar_lea.vmem %s823_s2, %s563_s27  ;;  %s313_s8 = scalar_lea.vmem %s824_s3, %s563_s27 }
  0x2b   : > { %357 = vmatpush.bf16.msra.mxu0 %v350_v8  ;;  %s321_s9 = scalar_lea.vmem %s825_s4, %s563_s27 }
  0x2f   : > { %358 = vmatpush.bf16.msra.mxu0 %v580_v9 }
  0x33   : > { %359 = vmatpush.bf16.msra.mxu0 %v579_v10 }
  0x36   : > { %576 = vmatmul.msk.bf16.vlgmr.msra.gmra.mxu0 %vm344_vm1, %v323_v11 }
  0xb3   : > { %v361_v12 = vpop.f32.mrf.mxu0 }
  0xb4   : > { %365 = vst [vmem:[%s305_s5] sm:$0xff] %v361_v12  ;;  %366 = vadd.xlane.f32.xlu0 %v361_v12  ;;  %v370_v13 = vmul.f32 %v361_v12, %v361_v12 }
  0xbb   : > { %v363_v14 = vpop.f32.mrf.mxu0 }
  0xbc   : > { %371 = vadd.xlane.f32.xlu0 %v370_v13 }
 0x127   : > { %v367_v15 = vpop.xlane.xlu0 %366 }
 0x128   : > { %369 = vst.msk [vmem:[%s313_s8] sm:$0xff] %vm368_vm2, %v367_v15 }
 0x12f   : > { %v372_v16 = vpop.xlane.xlu0 %371 }
 0x130   : > { %373 = vst.msk [vmem:[%s321_s9] sm:$0xff] %vm368_vm2, %v372_v16 }
 0x131 PF: > { %s15_s21 = sadd.s32 1, %s694_s21   ;;  %s826_s15 = smov %s674_s16 }
 0x132   : > { %p12_p12 = scmp.ge.s32.totalorder %s15_s21, 6   ;;  %s827_s16 = smov %s772_s28 }
 0x133   : > { %s828_s17 = smov %s686_s19  ;;  %s829_s18 = smov %s690_s20 }
 0x134   : > { %s830_s19 = smov %s833_s22  ;;  %s831_s20 = smov %s837_s23 }
 0x135   :  { %14 = sbr.rel (!%p12_p12) target bundleno = 4 (0x4), region = 128 }

// kernel: block_forward.3
= control target key start
LH: loop header
LB: loop body
LE: loop exit
PB: predicated region body
PF: predicated region fallthrough
CT: control target
= control target key end

     0   :  { %s419_s12 = smov 0   ;;  %s421_s13 = smov 0   ;;  %s476_s0 = inlined_call_operand.vmem [shape: f32[2,8,256], index: 0, kind: input, shape index: {}, may-alias: {0,3}]   ;;  %s477_s1 = inlined_call_operand.vmem [shape: f32[8,1], index: 1, kind: input, shape index: {}]   ;;  %s478_s2 = inlined_call_operand.vmem [shape: f32[8,1], index: 2, kind: input, shape index: {}]   ;;  %s479_s3 = inlined_call_operand.vmem [shape: f32[2,8,256], index: 3, kind: output, shape index: {}, may-alias: {0,3}]  }
   0x1   :  { %s423_s14 = smov 0   ;;  %s425_s15 = smov 0  }
   0x2   :  { %s427_s16 = smov 0  }
   0x3 LB: > { %s22_s17 = sadd.s32 1, %s388_s14  ;;  %s25_s18 = sadd.s32 1, %s392_s15  ;;  %s396_s16 = sphi %s427_s16, %s13_s16   ;;  %s392_s15 = sphi %s425_s15, %s483_s15   ;;  %s388_s14 = sphi %s423_s14, %s482_s14   ;;  %s384_s13 = sphi %s421_s13, %s481_s13   ;;  %s380_s12 = sphi %s419_s12, %s480_s12  }
   0x4   : > { %p23_p0 = scmp.ge.s32.totalorder %s22_s17, 2  ;;  %p309_p1 = scmp.ge.s32.totalorder %s396_s16, 1 }
   0x5   : > { %p156_p2 = scmp.lt.s32.totalorder %s396_s16, 5 }
   0x6   : > { %s485_s17 = smov (%p23_p0, %s22_s17), 0  ;;  %s487_s18 = smov (!%p23_p0, %s25_s18), %s392_s15 }
   0x7   : > { %p157_p3 = pnand %p309_p1, %p156_p2  ;;  %p27_p4 = scmp.ge.s32.totalorder %s487_s18, 2 }
   0x8   : > { %p186_p5 = scmp.lt.s32.totalorder (!%p157_p3), %s384_s13, 1  ;;  %p188_p6 = scmp.lt.s32.totalorder (!%p157_p3), %s380_s12, 1 }
   0x9   : > { %s489_s18 = smov (%p27_p4, %s487_s18), 0  ;;  %160 = sbr.rel (%p157_p3) target bundleno = 144 (0x90), region = 32 }
   0xe   : > { %v203_v0 = vld [vmem:[%s477_s1] sm:$0xff]  ;;  %v398_v1 = vmov 0   ;;  %s491_s13 = smov (!%p186_p5, %s384_s13), 1  ;;  %s493_s12 = smov (!%p188_p6, %s380_s12), 1 }
   0xf   : > { %357 = vset.pattern.permute.xlu0 %v398_v1  ;;  %v204_v2 = vld [vmem:[%s478_s2] sm:$0xff]  ;;  %s310_s23 = sshll.u32 %s491_s13, 1 }
  0x10   : > { %207 = vperm.xlu0 %357, %v203_v0   ;;  %s191_s24 = sadd.s32 %s310_s23, %s493_s12 }
  0x11   : > { %s311_s25 = sshll.u32 %s191_s24, 3 }
  0x12   : > { %s193_s28 = scalar_lea.vmem %s476_s0, %s311_s25  ;;  %s201_s4 = scalar_lea.vmem %s479_s3, %s311_s25 }
  0x13   : > { %v202_v4 = vld [vmem:[%s193_s28] sm:$0xff] }
  0x18   : > { %213 = vperm.xlu0 %357, %v204_v2  }
  0x82   : > { %v208_v3 = vpop.permute.xlu0 %207 }
  0x83   : > { %v210_v5 = vmul.f32 %v208_v3, %v202_v4 }
  0x8a   : > { %v214_v6 = vpop.permute.xlu0 %213 }
  0x8b   : > { %v216_v7 = vadd.f32 %v214_v6, %v210_v5 }
  0x8d   : > { %v217_v8 = vmax.f32 %v216_v7, 0.0 }
  0x8f   : > { %218 = vst [vmem:[%s201_s4] sm:$0xff] %v217_v8 }
  0x90 PF: > { %s13_s16 = sadd.s32 1, %s396_s16   ;;  %s480_s12 = smov %s388_s14 }
  0x91   : > { %p10_p7 = scmp.ge.s32.totalorder %s13_s16, 6   ;;  %s481_s13 = smov %s392_s15 }
  0x92   : > { %s482_s14 = smov %s485_s17  ;;  %s483_s15 = smov %s489_s18 }
  0x93   :  { %12 = sbr.rel (!%p10_p7) target bundleno = 3 (0x3), region = 62 }

</bundles_post_ra>
